<compile_context>
chip_gen: v6e
topology: v6e:2x2x1
jax: 0.10.0
libtpu: 0.0.40
codegen_flags: <defaults>
</compile_context>

<pallas_src>
import functools

import jax
import jax.numpy as jnp
from jax.experimental import pallas as pl
from jax.experimental.pallas import tpu as pltpu


def _ohem_pixel_kernel(x_ref, tgt_ref, out_ref, *, ignore_label, hw, tile_n):
    """Per-pixel softmax stats for one (C, tile_n) tile of one batch element.

    x_ref:   (C, tile_n) logits (any float dtype; upcast to f32 here).
    tgt_ref: (1, tile_n) int32 labels (ignore_label marks invalid pixels).
    out_ref: (2, tile_n) f32; row 0 = target-class prob (1.0 if invalid),
             row 1 = per-pixel cross-entropy (logsumexp - target logit).
    """
    x = x_ref[...].astype(jnp.float32)                       # (C, T)
    tgt = tgt_ref[...]                                       # (1, T) i32

    valid = tgt != ignore_label                              # (1, T) bool
    safe_tgt = jnp.where(valid, tgt, 0)                      # (1, T)

    # Boolean one-hot mask (no float one-hot materialized).
    cls_idx = jax.lax.broadcasted_iota(jnp.int32, x.shape, 0)    # (C, T)
    mask = cls_idx == safe_tgt                                   # (C, T)

    # Reductions over the class (sublane) axis; pixels stay lane-dense.
    mx = jnp.max(x, axis=0, keepdims=True)                       # (1, T)
    e = jnp.exp(x - mx)                                          # (C, T) single EUP pass
    sum_exp = jnp.sum(e, axis=0, keepdims=True)                  # (1, T)
    tgt_logit = jnp.sum(jnp.where(mask, x, 0.0), axis=0, keepdims=True)
    tgt_exp = jnp.sum(jnp.where(mask, e, 0.0), axis=0, keepdims=True)

    nll = mx + jnp.log(sum_exp) - tgt_logit                      # (1, T)
    # Exact divide (the result is compared against the OHEM threshold).
    prob = jnp.where(valid, tgt_exp / sum_exp, 1.0)              # (1, T)

    if hw % tile_n != 0:
        # Static ragged-tail case: mask out-of-range lanes for determinism
        # (Pallas already masks the ragged write-back).
        lane = (jax.lax.broadcasted_iota(jnp.int32, (1, tile_n), 1)
                + pl.program_id(1) * tile_n)
        in_bounds = lane < hw
        prob = jnp.where(in_bounds, prob, 1.0)
        nll = jnp.where(in_bounds, nll, 0.0)

    out_ref[0:1, :] = prob
    out_ref[1:2, :] = nll


def _pick_tile_n(c, hw, in_itemsize, tile_n=None):
    """Pixel-tile width: big enough to amortize per-step overhead, small enough
    to keep the per-tile VMEM working set (~double-buffered input + f32 temps)
    under ~20 MiB even for large class counts on v7x (64 MiB physical VMEM)."""
    if tile_n is None:
        budget = 20 * 1024 * 1024
        per_lane = c * (2 * in_itemsize + 6 * 4) + 24
        tile_n = budget // per_lane
    tile_n = int(max(128, min(8192, int(tile_n))))
    if hw <= tile_n:
        return hw                      # full-dim block: always layout-legal
    return (tile_n // 128) * 128       # lane-aligned


def _ohem_pixel_stats(pred, target, *, ignore_label, tile_n=None):
    """Run the Pallas kernel; returns (target_prob, nll), each shape (N,) f32."""
    b, c, h, w = pred.shape
    hw = h * w
    n = b * hw

    # Free reshapes only (no transpose, no padding of the logits).
    x = pred.reshape(b, c, hw)
    tgt = target.reshape(b, 1, hw).astype(jnp.int32)

    itemsize = jnp.dtype(pred.dtype).itemsize
    t = _pick_tile_n(c, hw, itemsize, tile_n)
    num_tiles = pl.cdiv(hw, t)

    # Explicit VMEM budget: double-buffered input + f32 temps + tgt/out.
    vmem_need = t * (2 * c * itemsize + 6 * c * 4 + 24)
    vmem_limit_bytes = int(min(56 * 2**20, max(32 * 2**20, 2 * vmem_need)))

    kernel = functools.partial(_ohem_pixel_kernel,
                               ignore_label=int(ignore_label), hw=hw, tile_n=t)

    out = pl.pallas_call(
        kernel,
        out_shape=jax.ShapeDtypeStruct((b, 2, hw), jnp.float32),
        grid=(b, num_tiles),
        in_specs=[pl.BlockSpec((None, c, t), lambda bi, ti: (bi, 0, ti)),
                  pl.BlockSpec((None, 1, t), lambda bi, ti: (bi, 0, ti))],
        out_specs=pl.BlockSpec((None, 2, t), lambda bi, ti: (bi, 0, ti)),
        compiler_params=pltpu.CompilerParams(
            dimension_semantics=("parallel", "parallel"),
            vmem_limit_bytes=vmem_limit_bytes),
    )(x, tgt)

    prob_t = out[:, 0, :].reshape(n)
    nll = out[:, 1, :].reshape(n)
    return prob_t, nll


def prob_ohem_cross_entropy_2d(pred, target, *, ignore_label=255, thresh=0.6,
                               min_kept=256, tile_n=None):
    """ProbOhemCrossEntropy2d forward (reduction='mean', weight=None).

    Passing bf16 `pred` halves HBM traffic for the (dominant) logits read;
    the kernel upcasts to f32 internally.
    """
    # TODO(synk): per-class `weight` for the inner CrossEntropyLoss is not supported.
    b, c, h, w = pred.shape
    n = b * h * w

    prob_t, nll = _ohem_pixel_stats(pred, target,
                                    ignore_label=ignore_label, tile_n=tile_n)

    tflat = target.reshape(-1)
    valid = tflat != ignore_label
    num_valid = jnp.sum(valid.astype(jnp.int32))

    # OHEM threshold: k-th smallest target-class prob (invalid pixels count as
    # prob=1.0, matching the PyTorch masked_fill).  Only the k-th value is
    # needed -> top_k instead of a full sort.
    if int(min_kept) > 0:
        k = min(n, int(min_kept))
        neg_topk, _ = jax.lax.top_k(-prob_t, k)
        kth = -neg_topk[k - 1]
        threshold = jnp.maximum(kth, jnp.float32(thresh))
    else:
        threshold = jnp.float32(thresh)
    kept = prob_t <= threshold

    # PyTorch: `if min_kept > num_valid: pass  elif num_valid > 0: <ohem>`
    use_ohem = (num_valid >= jnp.int32(int(min_kept))) & (num_valid > 0)
    final_valid = jnp.where(use_ohem, valid & kept, valid)

    # nn.CrossEntropyLoss(ignore_index=ignore_label, reduction='mean').
    # Note: count==0 (no valid pixel) yields NaN, matching PyTorch.
    count = jnp.sum(final_valid.astype(jnp.float32))
    loss_sum = jnp.sum(jnp.where(final_valid, nll, 0.0))
    return loss_sum / count


def _reference_loss(pred, target, *, ignore_label, thresh, min_kept):
    """Pure-JAX mirror of the PyTorch forward (eager Python control flow)."""
    b, c, h, w = pred.shape
    n = b * h * w
    tflat = target.reshape(-1)
    valid = tflat != ignore_label
    t = jnp.where(valid, tflat, 0).astype(jnp.int32)
    num_valid = int(jnp.sum(valid))

    logits = jnp.transpose(pred, (1, 0, 2, 3)).reshape(c, n).astype(jnp.float32)
    mx = jnp.max(logits, axis=0)
    lse = mx + jnp.log(jnp.sum(jnp.exp(logits - mx), axis=0))
    tgt_logit = logits[t, jnp.arange(n)]
    nll = lse - tgt_logit
    prob_t = jnp.where(valid, jnp.exp(tgt_logit - lse), 1.0)

    final_valid = valid
    if min_kept > num_valid:
        pass
    elif num_valid > 0:
        threshold = jnp.float32(thresh)
        if min_kept > 0:
            sp = jnp.sort(prob_t)
            kth = sp[min(n, min_kept) - 1]
            threshold = jnp.where(kth > thresh, kth, threshold)
        kept = prob_t <= threshold
        final_valid = valid & kept

    count = jnp.sum(final_valid.astype(jnp.float32))
    loss = jnp.sum(jnp.where(final_valid, nll, 0.0)) / count
    return loss, prob_t, nll


if __name__ == "__main__":
    B, C, H, W = 2, 4, 16, 16
    IGNORE, THRESH, MIN_KEPT = 255, 0.6, 256

    key = jax.random.PRNGKey(0)
    kx, kt, km = jax.random.split(key, 3)
    pred = jax.random.normal(kx, (B, C, H, W), dtype=jnp.float32)
    target = jax.random.randint(kt, (B, H, W), 0, C, dtype=jnp.int32)
    drop = jax.random.bernoulli(km, 0.1, (B, H, W))
    target = jnp.where(drop, jnp.int32(IGNORE), target)

    loss = prob_ohem_cross_entropy_2d(
        pred, target, ignore_label=IGNORE, thresh=THRESH, min_kept=MIN_KEPT)
    jax.block_until_ready(loss)

    ref_loss, ref_prob, ref_nll = _reference_loss(
        pred, target, ignore_label=IGNORE, thresh=THRESH, min_kept=MIN_KEPT)

    # 1) Auto tile (single full-width tile per batch element here).
    prob_t, nll = _ohem_pixel_stats(pred, target, ignore_label=IGNORE)
    assert jnp.allclose(prob_t, ref_prob, rtol=1e-5, atol=1e-5)
    assert jnp.allclose(nll, ref_nll, rtol=1e-5, atol=1e-5)

    # 2) Multi-tile path (tile_n=128 -> grid (B, 2)).
    prob_t2, nll2 = _ohem_pixel_stats(pred, target, ignore_label=IGNORE, tile_n=128)
    assert jnp.allclose(prob_t2, ref_prob, rtol=1e-5, atol=1e-5)
    assert jnp.allclose(nll2, ref_nll, rtol=1e-5, atol=1e-5)

    # 3) Ragged-tail path: hw=400 not a multiple of tile_n=128.
    H2 = W2 = 20
    pred2 = jax.random.normal(kx, (B, C, H2, W2), dtype=jnp.float32)
    target2 = jax.random.randint(kt, (B, H2, W2), 0, C, dtype=jnp.int32)
    _, ref2_prob, ref2_nll = _reference_loss(
        pred2, target2, ignore_label=IGNORE, thresh=THRESH, min_kept=MIN_KEPT)
    prob_t3, nll3 = _ohem_pixel_stats(pred2, target2, ignore_label=IGNORE, tile_n=128)
    assert jnp.allclose(prob_t3, ref2_prob, rtol=1e-5, atol=1e-5)
    assert jnp.allclose(nll3, ref2_nll, rtol=1e-5, atol=1e-5)

    # 4) bf16 logits at the boundary (HBM traffic halved; kernel upcasts).
    pred_bf = pred.astype(jnp.bfloat16)
    _, refb_prob, refb_nll = _reference_loss(
        pred_bf.astype(jnp.float32), target,
        ignore_label=IGNORE, thresh=THRESH, min_kept=MIN_KEPT)
    prob_bf, nll_bf = _ohem_pixel_stats(pred_bf, target, ignore_label=IGNORE)
    assert jnp.allclose(prob_bf, refb_prob, rtol=1e-5, atol=1e-5)
    assert jnp.allclose(nll_bf, refb_nll, rtol=1e-5, atol=1e-5)

    # Final scalar: slightly generous tolerance (a pixel sitting exactly at the
    # OHEM threshold could differ by 1 ulp between the two prob computations).
    assert jnp.allclose(loss, ref_loss, rtol=1e-3, atol=1e-3), (loss, ref_loss)

    print("KERNEL_OK")
</pallas_src>

<mosaic_0001>
module attributes {stable_mosaic.version = 11 : i64} {
  func.func @_ohem_pixel_kernel(%arg0: i32, %arg1: i32, %arg2: memref<1x4x256xf32, #tpu.memory_space<vmem>>, %arg3: memref<1x1x256xi32, #tpu.memory_space<vmem>>, %arg4: memref<1x2x256xf32, #tpu.memory_space<vmem>>) attributes {dimension_semantics = [#tpu.dimension_semantics<parallel>, #tpu.dimension_semantics<parallel>], iteration_bounds = array<i64: 2, 1>, scalar_prefetch = 0 : i64, scratch_operands = 0 : i64, tpu.core_type = #tpu.core_type<tc>, window_params = [{transform_indices = @transform_0, window_bounds = array<i64: 1, 4, 256>}, {transform_indices = @transform_1, window_bounds = array<i64: 1, 1, 256>}, {transform_indices = @transform_2, window_bounds = array<i64: 1, 2, 256>}]} {
    %c0 = arith.constant 0 : index
    %c0_0 = arith.constant 0 : index
    %c0_1 = arith.constant 0 : index
    %0 = vector.load %arg2[%c0, %c0_0, %c0_1] : memref<1x4x256xf32, #tpu.memory_space<vmem>>, vector<1x4x256xf32>
    %1 = vector.shape_cast %0 : vector<1x4x256xf32> to vector<4x256xf32>
    %c0_2 = arith.constant 0 : index
    %c0_3 = arith.constant 0 : index
    %c0_4 = arith.constant 0 : index
    %2 = vector.load %arg3[%c0_2, %c0_3, %c0_4] : memref<1x1x256xi32, #tpu.memory_space<vmem>>, vector<1x1x256xi32>
    %3 = vector.shape_cast %2 : vector<1x1x256xi32> to vector<1x256xi32>
    %c255_i32 = arith.constant 255 : i32
    %4 = vector.broadcast %c255_i32 : i32 to vector<1x256xi32>
    %5 = arith.cmpi ne, %3, %4 : vector<1x256xi32>
    %c0_i32 = arith.constant 0 : i32
    %6 = vector.broadcast %c0_i32 : i32 to vector<1x256xi32>
    %7 = arith.select %5, %3, %6 : vector<1x256xi1>, vector<1x256xi32>
    %8 = tpu.iota {dimensions = array<i32: 0>} : vector<4x256xi32>
    %9 = vector.broadcast %7 : vector<1x256xi32> to vector<4x256xi32>
    %10 = arith.cmpi eq, %8, %9 : vector<4x256xi32>
    %cst = arith.constant dense<0xFF800000> : vector<256xf32>
    %11 = vector.multi_reduction <maximumf>, %1, %cst [0] : vector<4x256xf32> to vector<256xf32>
    %12 = vector.shape_cast %11 : vector<256xf32> to vector<1x256xf32>
    %13 = vector.broadcast %12 : vector<1x256xf32> to vector<4x256xf32>
    %14 = arith.subf %1, %13 : vector<4x256xf32>
    %15 = math.exp %14 : vector<4x256xf32>
    %cst_5 = arith.constant dense<0.000000e+00> : vector<256xf32>
    %16 = vector.multi_reduction <add>, %15, %cst_5 [0] : vector<4x256xf32> to vector<256xf32>
    %17 = vector.shape_cast %16 : vector<256xf32> to vector<1x256xf32>
    %cst_6 = arith.constant 0.000000e+00 : f32
    %18 = vector.broadcast %cst_6 : f32 to vector<4x256xf32>
    %19 = arith.select %10, %1, %18 : vector<4x256xi1>, vector<4x256xf32>
    %cst_7 = arith.constant dense<0.000000e+00> : vector<256xf32>
    %20 = vector.multi_reduction <add>, %19, %cst_7 [0] : vector<4x256xf32> to vector<256xf32>
    %21 = vector.shape_cast %20 : vector<256xf32> to vector<1x256xf32>
    %cst_8 = arith.constant 0.000000e+00 : f32
    %22 = vector.broadcast %cst_8 : f32 to vector<4x256xf32>
    %23 = arith.select %10, %15, %22 : vector<4x256xi1>, vector<4x256xf32>
    %cst_9 = arith.constant dense<0.000000e+00> : vector<256xf32>
    %24 = vector.multi_reduction <add>, %23, %cst_9 [0] : vector<4x256xf32> to vector<256xf32>
    %25 = vector.shape_cast %24 : vector<256xf32> to vector<1x256xf32>
    %26 = math.log %17 : vector<1x256xf32>
    %27 = arith.addf %12, %26 : vector<1x256xf32>
    %28 = arith.subf %27, %21 : vector<1x256xf32>
    %29 = arith.divf %25, %17 : vector<1x256xf32>
    %cst_10 = arith.constant 1.000000e+00 : f32
    %30 = vector.broadcast %cst_10 : f32 to vector<1x256xf32>
    %31 = arith.select %5, %29, %30 : vector<1x256xi1>, vector<1x256xf32>
    %c0_11 = arith.constant 0 : index
    %c0_12 = arith.constant 0 : index
    %c0_13 = arith.constant 0 : index
    %32 = vector.load %arg4[%c0_11, %c0_12, %c0_13] : memref<1x2x256xf32, #tpu.memory_space<vmem>>, vector<1x1x256xf32>
    %33 = vector.shape_cast %32 : vector<1x1x256xf32> to vector<1x256xf32>
    %34 = vector.shape_cast %31 : vector<1x256xf32> to vector<1x1x256xf32>
    tpu.vector_store %arg4[%c0_11, %c0_12, %c0_13], %34 {strides = array<i32>} : memref<1x2x256xf32, #tpu.memory_space<vmem>>, vector<1x1x256xf32>,
    %c0_14 = arith.constant 0 : index
    %c1 = arith.constant 1 : index
    %c0_15 = arith.constant 0 : index
    %35 = vector.load %arg4[%c0_14, %c1, %c0_15] : memref<1x2x256xf32, #tpu.memory_space<vmem>>, vector<1x1x256xf32>
    %36 = vector.shape_cast %35 : vector<1x1x256xf32> to vector<1x256xf32>
    %37 = vector.shape_cast %28 : vector<1x256xf32> to vector<1x1x256xf32>
    tpu.vector_store %arg4[%c0_14, %c1, %c0_15], %37 {strides = array<i32>} : memref<1x2x256xf32, #tpu.memory_space<vmem>>, vector<1x1x256xf32>,
    return
  }
  func.func @transform_0(%arg0: i32, %arg1: i32) -> (i32, i32, i32) {
    %c0_i32 = arith.constant 0 : i32
    %c0_i32_0 = arith.constant 0 : i32
    return %arg0, %c0_i32, %arg1 : i32, i32, i32
  }
  func.func @transform_1(%arg0: i32, %arg1: i32) -> (i32, i32, i32) {
    %c0_i32 = arith.constant 0 : i32
    %c0_i32_0 = arith.constant 0 : i32
    return %arg0, %c0_i32, %arg1 : i32, i32, i32
  }
  func.func @transform_2(%arg0: i32, %arg1: i32) -> (i32, i32, i32) {
    %c0_i32 = arith.constant 0 : i32
    %c0_i32_0 = arith.constant 0 : i32
    return %arg0, %c0_i32, %arg1 : i32, i32, i32
  }
}

</mosaic_0001>

<bundles_post_ra>
// kernel: tpu_custom_call.1
= control target key start
LH: loop header
LB: loop body
LE: loop exit
PB: predicated region body
PF: predicated region fallthrough
CT: control target
= control target key end

     0   :  { %7 = vsyncpa [#allocation3], 0  ;;  %s963_s0 = inlined_call_operand.hbm [shape: f32[2,4,256], index: 0, kind: input, shape index: {}]   ;;  %s964_s1 = inlined_call_operand.hbm [shape: s32[2,1,256], index: 1, kind: input, shape index: {}]   ;;  %s965_s2 = inlined_call_operand.hbm [shape: f32[2,2,256], index: 2, kind: output, shape index: {}]  }
   0x1   :  { %9 = vsyncpa [#allocation3 + $0x1], 0 }
   0x2   :  { %10 = vsyncpa [#allocation6], 0 }
   0x3   :  { %12 = vsyncpa [#allocation6 + $0x1], 0 }
   0x4   :  { %13 = vsyncpa [#allocation4], 0 }
   0x5   :  { %15 = vsyncpa [#allocation4 + $0x1], 0  ;;  %s759_s9 = smov 0   ;;  %s761_s10 = smov 0  }
   0x6   :  { %s763_s11 = smov 0   ;;  %s765_s12 = smov 0  }
   0x7   :  { %s767_s13 = smov 0   ;;  %s769_s14 = smov 0  }
   0x8 LB: > { %s496_s15 = sadd.s32 4294967295, %s738_s14   ;;  %s497_s16 = sadd.s32 4294967294, %s738_s14   ;;  %s738_s14 = sphi %s769_s14, %s21_s14   ;;  %s734_s13 = sphi %s767_s13, %s977_s13   ;;  %s730_s12 = sphi %s765_s12, %s976_s12   ;;  %s726_s11 = sphi %s763_s11, %s975_s11   ;;  %s722_s10 = sphi %s761_s10, %s974_s10   ;;  %s718_s9 = sphi %s759_s9, %s973_s9  }
   0x9   : > { %s33_s17 = sadd.s32 1, %s734_s13  ;;  %s42_s18 = sadd.s32 1, %s726_s11 }
   0xa   : > { %p35_p0 = scmp.ge.s32.totalorder %s33_s17, 2  ;;  %p49_p1 = scmp.ne.s32.totalorder %s726_s11, %s722_s10 }
   0xb   : > { %p50_p2 = scmp.eq.s32.totalorder %s738_s14, 0  ;;  %p55_p3 = scmp.ne.s32.totalorder %s722_s10, %s718_s9 }
   0xc   : > { %s979_s17 = smov (%p35_p0, %s33_s17), 0  ;;  %p56_p5 = scmp.eq.s32.totalorder %s496_s15, 0 }
   0xd   : > { %p800_p4 = por %p50_p2, %p49_p1  ;;  %s37_s20 = ssub.s32 %s734_s13, %s979_s17 }
   0xe   : > { %p109_p6 = scmp.eq.s32.totalorder %s496_s15, 1  ;;  %p40_p7 = scmp.eq.s32.totalorder %s37_s20, 0 }
   0xf   : > { %p806_p8 = por %p56_p5, %p55_p3  ;;  %p115_p10 = scmp.eq.s32.totalorder %s497_s16, 1 }
  0x10   : > { %p810_p9 = por %p109_p6, %p49_p1  ;;  %p536_p13 = scmp.lt.s32.totalorder %s738_s14, 2 }
  0x11   : > { %s815_s23 = scalar_select %p40_p7, %s726_s11, %s42_s18  }
  0x12   : > { %p817_p11 = por %p115_p10, %p55_p3  ;;  %s824_s25 = sand.u32 1, %s726_s11  }
  0x13   : > { %s500_s26 = sshll.u32 %s824_s25, 3  ;;  %s516_s27 = sshll.u32 %s734_s13, 7 }
  0x14   : > { %s147_s30 = scalar_lea.hbm %s963_s0, %s516_s27  ;;  %s139_s3 = scalar_lea.vmem [#allocation2], %s500_s26 }
  0x15   : > { %s149_s4 = sshll.u32 %s139_s3, 4  ;;  %p833_p0 = pnand %p536_p13, %p800_p4  ;;  %s150_s4 = int_to_ptr.vmem [resolvable:$true] %s149_s4 }
  0x16   : > { %p506_p1 = scmp.ge.s32.totalorder %s738_s14, 1  ;;  %p175_p2 = scmp.lt.s32.totalorder %s738_s14, 3 }
  0x17   : > { %s136_s6 = scalar_lea.sflag [#allocation3], %s824_s25  ;;  %p600_p3 = pneg %p833_p0 }
  0x18   : > { %s611_s7 = scalar_lea.vmem %s150_s4, 128  ;;  %s740_s8 = smov [#allocation2]  }
  0x19   : > { %p612_p5 = scmp.ne.s32.totalorder %s150_s4, %s611_s7  ;;  %s616_s15 = sshll.u32 %s740_s8, 4  ;;  %s617_s15 = int_to_ptr.vmem [resolvable:$false] %s616_s15 }
  0x1a   : > { %s618_s16 = scalar_lea.vmem %s617_s15, 256  ;;  %p619_p4 = scmp.lt.s32.totalorder %s150_s4, %s617_s15 }
  0x1b   : > { %p614_p6 = pnand %p612_p5, %p600_p3  ;;  %p620_p10 = scmp.lt.s32.totalorder %s618_s16, %s611_s7 }
  0x1d   : > { %p615_p7 = pneg %p614_p6  ;;  %p621_p13 = por %p620_p10, %p619_p4 }
  0x1f   : > { %p622_p12 = pnand %p621_p13, %p615_p7 }
  0x21   : > { %625 = shalt.err (!%p622_p12)
}
  0x22   : > { %528 = dma.hbm_to_vmem [thread:$0]  (!%p833_p0), %s147_s30, 128, %s150_s4, %s136_s6  }
  0x23   : > { %p851_p5 = pnand %p506_p1, %p175_p2  ;;  %s503_s19 = sshll.u32 %s824_s25, 1 }
  0x24   : > { %s517_s20 = sshll.u32 %s734_s13, 5  ;;  %s160_s29 = scalar_lea.vmem [#allocation5], %s503_s19 }
  0x25   : > { %s168_s28 = scalar_lea.hbm %s964_s1, %s517_s20  ;;  %s170_s3 = sshll.u32 %s160_s29, 4  ;;  %s171_s3 = int_to_ptr.vmem [resolvable:$true] %s170_s3 }
  0x26   : > { %s157_s7 = scalar_lea.sflag [#allocation6], %s824_s25  ;;  %s639_s8 = scalar_lea.vmem %s171_s3, 32 }
  0x27   : > { %p640_p12 = scmp.ne.s32.totalorder %s171_s3, %s639_s8  ;;  %s741_s30 = smov [#allocation5]  }
  0x28   : > { %s644_s4 = sshll.u32 %s741_s30, 4  ;;  %s645_s4 = int_to_ptr.vmem [resolvable:$false] %s644_s4 }
  0x29   : > { %p642_p6 = pnand %p640_p12, %p600_p3  ;;  %s646_s6 = scalar_lea.vmem %s645_s4, 64 }
  0x2a   : > { %p647_p1 = scmp.lt.s32.totalorder %s171_s3, %s645_s4  ;;  %p648_p2 = scmp.lt.s32.totalorder %s646_s6, %s639_s8 }
  0x2b   : > { %p643_p7 = pneg %p642_p6 }
  0x2c   : > { %p649_p4 = por %p648_p2, %p647_p1 }
  0x2e   : > { %p650_p10 = pnand %p649_p4, %p643_p7 }
  0x30   : > { %653 = shalt.err (!%p650_p10)
}
  0x31   : > { %531 = dma.hbm_to_vmem [thread:$0]  (!%p833_p0), %s168_s28, 32, %s171_s3, %s157_s7  }
  0x32   : > { %179 = sbr.rel (%p851_p5) target bundleno = 149 (0x95), region = 28  ;;  %s869_s25 = sand.u32 (!%p851_p5), 1, %s722_s10  }
  0x33   : > { %s507_s15 = sshll.u32 (!%p851_p5), %s869_s25, 3  ;;  %s182_s16 = scalar_lea.sflag (!%p851_p5), [#allocation3], %s869_s25 }
  0x34   : > { %s185_s19 = scalar_lea.vmem (!%p851_p5), [#allocation2], %s507_s15 }
  0x37   : > { %705 = dma.done.wait (%p806_p8), %s182_s16, 128  }
  0x38   : > { %707 = vsyncadd (%p806_p8), %s182_s16, 4294967168  ;;  %s508_s5 = sshll.u32 %s869_s25, 1  ;;  %s191_s18 = scalar_lea.sflag [#allocation6], %s869_s25 }
  0x39   : > { %s194_s20 = scalar_lea.vmem [#allocation5], %s508_s5 }
  0x3a   : > { %709 = dma.done.wait (%p806_p8), %s191_s18, 32  }
  0x3b   : > { %711 = vsyncadd (%p806_p8), %s191_s18, 4294967264  ;;  %vm242_vm0 = vcmask 1043456   ;;  %v223_v0 = vld [vmem:[%s185_s19] sm:$0xff]  ;;  %v227_v17 = vlaneseq  ;;  %v891_v19 = vld [vmem:[%s194_s20] sm:$0x3]  ;;  %s509_s21 = sshll.u32 %s869_s25, 2 }
  0x3c   : > { %v240_v1 = vcombine.high %v223_v0, %v223_v0  ;;  %v243_v2 = vsel %vm242_vm0, %v223_v0, -inf  ;;  %vm225_vm1 = vcmp.ne.s32.totalorder %v891_v19, 255  ;;  %s219_s26 = scalar_lea.vmem [#allocation7], %s509_s21  ;;  %s518_s28 = sshll.u32 %s730_s12, 6 }
  0x3d   : > { %v244_v3 = vrot.slane %v243_v2, 4  ;;  %v894_v21 = vshrl.u32 %v227_v17, 7  ;;  %v226_v23 = vsel %vm225_vm1, %v891_v19, 0  ;;  %vm346_vm4 = vcmp.lt.s32.totalorder %v227_v17, 256  ;;  %s386_s27 = sshll.u32 %s219_s26, 4  ;;  %s384_s7 = scalar_lea.hbm %s965_s2, %s518_s28  ;;  %s918_s27 = int_to_ptr.vmem [resolvable:$true] %s386_s27 }
  0x3e   : > { %v250_v4 = vsel %vm242_vm0, %v240_v1, -inf  ;;  %s370_s8 = scalar_lea.sflag [#allocation4], %s869_s25  ;;  %s654_s30 = scalar_lea.vmem %s918_s27, 64 }
  0x3f   : > { %v245_v5 = vmax.f32 %v243_v2, %v244_v3  ;;  %v251_v6 = vrot.slane %v250_v4, 4  ;;  %v231_v22 = vsub.s32 0, %v894_v21  ;;  %v235_v24 = vsub.s32 1, %v894_v21  ;;  %p655_p8 = scmp.ne.s32.totalorder %s918_s27, %s654_s30  ;;  %s743_s12 = smov [#allocation7]  }
  0x40   : > { %s658_s4 = sshll.u32 %s743_s12, 4  ;;  %s659_s4 = int_to_ptr.vmem [resolvable:$false] %s658_s4 }
  0x41   : > { %v246_v7 = vrot.slane %v245_v5, 2  ;;  %v252_v8 = vmax.f32 %v250_v4, %v251_v6  ;;  %v232_v25 = vrot.slane %v226_v23, %v231_v22  ;;  %v236_v26 = vrot.slane %v226_v23, %v235_v24  ;;  %p656_p0 = pnand %p655_p8, %p810_p9  ;;  %s660_s6 = scalar_lea.vmem %s659_s4, 128 }
  0x42   : > { %p661_p13 = scmp.lt.s32.totalorder %s918_s27, %s659_s4  ;;  %p662_p5 = scmp.lt.s32.totalorder %s660_s6, %s654_s30 }
  0x43   : > { %v247_v9 = vmax.f32 %v245_v5, %v246_v7  ;;  %v253_v10 = vrot.slane %v252_v8, 2  ;;  %vm237_vm2 = vcmp.eq.s32.totalorder %v894_v21, %v232_v25  ;;  %vm238_vm3 = vcmp.eq.s32.totalorder %v894_v21, %v236_v26  ;;  %p657_p3 = pneg %p656_p0 }
  0x44   : > { %v281_v34 = vsel %vm237_vm2, %v223_v0, 0.0  ;;  %v282_v38 = vsel %vm238_vm3, %v240_v1, 0.0  ;;  %v742_v5 = vmov 1966171168   ;;  %p663_p12 = por %p662_p5, %p661_p13 }
  0x45   : > { %v248_v11 = vrot.slane %v247_v9, 1  ;;  %v254_v12 = vmax.f32 %v252_v8, %v253_v10  ;;  %v283_v43 = vsel %vm242_vm0, %v281_v34, 0.0  ;;  %v290_v44 = vsel %vm242_vm0, %v282_v38, 0.0 }
  0x46   : > { %v284_v48 = vrot.slane %v283_v43, 4  ;;  %v291_v52 = vrot.slane %v290_v44, 4  ;;  %v329_v6 = vunpack.c.l.s4 %v742_v5  ;;  %p664_p6 = pnand %p663_p12, %p657_p3 }
  0x47   : > { %v885_v13 = vmax.f32 %v247_v9, %v248_v11  ;;  %v255_v14 = vrot.slane %v254_v12, 1 }
  0x48   : > { %v285_v56 = vadd.f32 %v284_v48, %v283_v43  ;;  %v292_v59 = vadd.f32 %v291_v52, %v290_v44 }
  0x49   : > { %v887_v15 = vmax.f32 %v254_v12, %v255_v14  ;;  %v330_v12 = vunpack.c.0.s8 %v329_v6 }
  0x4a   : > { %v286_v61 = vrot.slane %v285_v56, 2  ;;  %v293_v63 = vrot.slane %v292_v59, 2 }
  0x4b   : > { %v259_v16 = vcombine.low %v885_v13, %v887_v15 }
  0x4c   : > { %v287_v1 = vadd.f32 %v286_v61, %v285_v56  ;;  %v294_v3 = vadd.f32 %v293_v63, %v292_v59 }
  0x4d   : > { %v261_v18 = vsub.f32 %v223_v0, %v259_v16 }
  0x4e   : > { %v288_v7 = vrot.slane %v287_v1, 1  ;;  %v295_v9 = vrot.slane %v294_v3, 1 }
  0x4f   : > { %v262_v20 = vmul.f32 1.442695, %v261_v18 }
  0x50   : > { %v296_v24 = vadd.f32 %v295_v9, %v294_v3 }
  0x51   : > { %588 = vpow2.f32 %v262_v20  ;;  %v289_v20 = vadd.f32 %v288_v7, %v287_v1 }
  0x5e   : > { %v589_v27 = vpop.eup %588 }
  0x5f   : > { %v265_v28 = vcombine.high %v589_v27, %v589_v27  ;;  %v267_v29 = vsel %vm242_vm0, %v589_v27, 0.0  ;;  %v297_v30 = vsel %vm237_vm2, %v589_v27, 0.0  ;;  %v333_v27 = vsub.s32 %v330_v12, %v894_v21 }
  0x60   : > { %v268_v31 = vrot.slane %v267_v29, 4  ;;  %v299_v32 = vsel %vm242_vm0, %v297_v30, 0.0 }
  0x61   : > { %v274_v33 = vsel %vm242_vm0, %v265_v28, 0.0  ;;  %v298_v35 = vsel %vm238_vm3, %v265_v28, 0.0  ;;  %v300_v40 = vrot.slane %v299_v32, 4 }
  0x62   : > { %v269_v36 = vadd.f32 %v268_v31, %v267_v29  ;;  %v275_v37 = vrot.slane %v274_v33, 4  ;;  %v306_v39 = vsel %vm242_vm0, %v298_v35, 0.0 }
  0x63   : > { %v307_v45 = vrot.slane %v306_v39, 4  ;;  %v301_v49 = vadd.f32 %v300_v40, %v299_v32 }
  0x64   : > { %v270_v41 = vrot.slane %v269_v36, 2  ;;  %v276_v42 = vadd.f32 %v275_v37, %v274_v33 }
  0x65   : > { %v308_v53 = vadd.f32 %v307_v45, %v306_v39  ;;  %v302_v57 = vrot.slane %v301_v49, 2 }
  0x66   : > { %v271_v46 = vadd.f32 %v270_v41, %v269_v36  ;;  %v277_v47 = vrot.slane %v276_v42, 2 }
  0x67   : > { %v309_v60 = vrot.slane %v308_v53, 2  ;;  %v303_v62 = vadd.f32 %v302_v57, %v301_v49 }
  0x68   : > { %v272_v50 = vrot.slane %v271_v46, 1  ;;  %v278_v51 = vadd.f32 %v277_v47, %v276_v42 }
  0x69   : > { %v310_v0 = vadd.f32 %v309_v60, %v308_v53  ;;  %v304_v2 = vrot.slane %v303_v62, 1 }
  0x6a   : > { %v273_v54 = vadd.f32 %v272_v50, %v271_v46  ;;  %v279_v55 = vrot.slane %v278_v51, 1 }
  0x6b   : > { %v311_v4 = vrot.slane %v310_v0, 1  ;;  %v305_v8 = vadd.f32 %v304_v2, %v303_v62 }
  0x6c   : > { %v280_v58 = vadd.f32 %v279_v55, %v278_v51  ;;  %590 = vrcp.f32 %v273_v54 }
  0x6d   : > { %592 = vlog2.f32 %v273_v54  ;;  %v312_v11 = vadd.f32 %v311_v4, %v310_v0 }
  0x6e   : > { %594 = vlog2.f32 %v280_v58 }
  0x6f   : > { %596 = vrcp.f32 %v280_v58 }
  0x79   : > { %v591_v10 = vpop.eup %590 }
  0x7a   : > { %v593_v14 = vpop.eup %592  ;;  %v322_v18 = vmul.f32 %v591_v10, %v305_v8 }
  0x7b   : > { %v595_v16 = vpop.eup %594  ;;  %v314_v22 = vmul.f32 0.6931472, %v593_v14 }
  0x7c   : > { %v597_v23 = vpop.eup %596  ;;  %v316_v25 = vmul.f32 0.6931472, %v595_v16 }
  0x7d   : > { %v324_v26 = vmul.f32 %v597_v23, %v312_v11  ;;  %v317_v28 = vadd.f32 %v314_v22, %v885_v13 }
  0x7e   : > { %v318_v29 = vadd.f32 %v316_v25, %v887_v15 }
  0x7f   : > { %v327_v30 = vcombine.low %v322_v18, %v324_v26  ;;  %v319_v31 = vsub.f32 %v317_v28, %v289_v20 }
  0x80   : > { %v320_v32 = vsub.f32 %v318_v29, %v296_v24 }
  0x81   : > { %v334_v33 = vrot.slane %v327_v30, %v333_v27 }
  0x82   : > { %v351_v34 = vcombine.low %v319_v31, %v320_v32 }
  0x83   : > { %v341_v35 = vrot.slane %v334_v33, %v333_v27 }
  0x84   : > { %v358_v36 = vrot.slane %v351_v34, %v333_v27 }
  0x85   : > { %v343_v21 = vsel %vm225_vm1, %v341_v35, 1.0 }
  0x86   : > { %348 = vst.msk [vmem:[%s219_s26] ss:$2 sm:$0x3] %vm346_vm4, %v343_v21  ;;  %v365_v13 = vrot.slane %v358_v36, %v333_v27 }
  0x88   : > { %510 = vst.msk [vmem:[%s219_s26 + $0x1] ss:$2 sm:$0x3] %vm346_vm4, %v365_v13 }
  0x89   : > { %667 = shalt.err (!%p664_p6)
}
  0x8a   : > { %s668_s15 = scalar_lea.hbm %s384_s7, 64  ;;  %s672_s19 = scalar_lea.hbm %s965_s2, 128 }
  0x8b   : > { %p669_p7 = scmp.ne.s32.totalorder %s384_s7, %s668_s15  ;;  %p673_p4 = scmp.lt.s32.totalorder %s384_s7, %s965_s2 }
  0x8c   : > { %p674_p10 = scmp.lt.s32.totalorder %s672_s19, %s668_s15 }
  0x8d   : > { %p670_p1 = pnand %p669_p7, %p810_p9 }
  0x8e   : > { %p675_p8 = por %p674_p10, %p673_p4 }
  0x8f   : > { %p671_p2 = pneg %p670_p1 }
  0x91   : > { %p676_p0 = pnand %p675_p8, %p671_p2 }
  0x93   : > { %679 = shalt.err (!%p676_p0)
}
  0x94   : > { %523 = dma.vmem_to_hbm [thread:$0]  (%p810_p9), %s918_s27, 64, %s384_s7, %s370_s8  }
  0x95 PF: > { %s398_s20 = sand.u32 1, %s718_s9   ;;  %p972_p3 = scmp.ge.s32.totalorder %s738_s14, 2 }
  0x96   : > { %s399_s21 = scalar_lea.sflag [#allocation4], %s398_s20 }
  0x97   : > { %p533_p13 = pnand %p972_p3, %p817_p11 }
  0x99   : > { %p534_p5 = pneg %p533_p13 }
  0x9b   : > { %713 = dma.done.wait (%p534_p5), %s399_s21, 64  }
  0x9c   : > { %715 = vsyncadd (%p534_p5), %s399_s21, 4294967232  ;;  %s21_s14 = sadd.s32 1, %s738_s14   ;;  %s973_s9 = smov %s722_s10 }
  0x9d   : > { %p18_p12 = scmp.ge.s32.totalorder %s21_s14, 4   ;;  %s974_s10 = smov %s726_s11 }
  0x9e   : > { %s975_s11 = smov %s815_s23  ;;  %s976_s12 = smov %s734_s13 }
  0x9f   : > { %s977_s13 = smov %s979_s17  ;;  %20 = sbr.rel (!%p18_p12) target bundleno = 8 (0x8), region = 87 }
  0xa4   :  { %404 = vsyncpa [#allocation3], 1 }
  0xa5   :  { %406 = vsyncpa [#allocation3 + $0x1], 1 }
  0xa6   :  { %407 = vsyncpa [#allocation6], 1 }
  0xa7   :  { %409 = vsyncpa [#allocation6 + $0x1], 1 }
  0xa8   :  { %410 = vsyncpa [#allocation4], 1 }
  0xa9   :  { %412 = vsyncpa [#allocation4 + $0x1], 1 }

</bundles_post_ra>
